<compile_context>
chip_gen: v6e
topology: v6e:2x2x1
jax: 0.10.0
libtpu: 0.0.40
codegen_flags: <defaults>
</compile_context>

<pallas_src>
import functools

import jax
import jax.numpy as jnp
from jax.experimental import pallas as pl
from jax.experimental.pallas import tpu as pltpu

H = 128      # hidden width of fc_1 / fc_2
LANE = 128   # TPU lane width; fc_3 output is padded up to a multiple of this


def _round_up(x, m):
    return (x + m - 1) // m * m


def _cdiv(a, b):
    return -(-a // b)


def _dqn_mlp_kernel(x_ref, w_ref, b_ref, out_ref, *, k1, n3):
    """One batch tile of the fused fc1->relu->fc2->relu->fc3 forward.

    x_ref  : (TB, obs_dim)        f32
    w_ref  : (pad_in, 2*H + n3)   weight dtype (bf16 or f32);
             cols [0:H]=W1^T (rows 0:k1 valid), [H:2H]=W2^T, [2H:2H+n3]=W3^T (zero-padded)
    b_ref  : (1, 2*H + n3)        f32;  same column layout (b3 zero-padded to n3 lanes)
    out_ref: (TB, n3)             out dtype; lanes >= act_dim are exactly 0
    """
    obs_dim = x_ref.shape[-1]
    x = x_ref[...]
    if obs_dim < k1:
        # Static-shape zero pad of the contraction dim so the (sublane-aligned)
        # k1-row slice of W1 can be used without a misaligned weight slice.
        x = jnp.concatenate(
            [x, jnp.zeros((x.shape[0], k1 - obs_dim), x.dtype)], axis=-1)
    x = x.astype(w_ref.dtype)

    w1 = w_ref[:k1, 0:H]
    w2 = w_ref[:H, H:2 * H]
    w3 = w_ref[:H, 2 * H:2 * H + n3]
    b1 = b_ref[:, 0:H]
    b2 = b_ref[:, H:2 * H]
    b3 = b_ref[:, 2 * H:2 * H + n3]

    # fc_1 + ReLU (MXU in weight dtype, accumulate / bias add / ReLU in f32)
    h1 = jnp.maximum(jnp.dot(x, w1, preferred_element_type=jnp.float32) + b1, 0.0)
    # fc_2 + ReLU
    h2 = jnp.maximum(
        jnp.dot(h1.astype(w_ref.dtype), w2, preferred_element_type=jnp.float32) + b2, 0.0)
    # fc_3 (Q-values, no activation). Padded output lanes stay 0 (zero W3/b3 pad).
    q = jnp.dot(h2.astype(w_ref.dtype), w3, preferred_element_type=jnp.float32) + b3
    out_ref[...] = q.astype(out_ref.dtype)


def prepare_params(params, weight_dtype=jnp.bfloat16):
    """One-time packing of PyTorch-convention params. Do NOT call per forward.

    weight_dtype=jnp.bfloat16 : fastest (native MXU), ~1e-2 abs error on Q.
    weight_dtype=jnp.float32  : tighter numerics for TD-loss consumers.
    """
    w1, b1 = params["fc_1.weight"], params["fc_1.bias"]   # (H, obs_dim), (H,)
    w2, b2 = params["fc_2.weight"], params["fc_2.bias"]   # (H, H),       (H,)
    w3, b3 = params["fc_3.weight"], params["fc_3.bias"]   # (act_dim, H), (act_dim,)
    obs_dim = int(w1.shape[1])
    act_dim = int(w3.shape[0])

    k1 = _round_up(obs_dim, 16)        # sublane-aligned fc1 contraction rows (bf16 packs 16/tile)
    pad_in = max(H, k1)                # shared row count of the packed weight buffer
    n3 = _round_up(act_dim, LANE)      # lane-padded fc3 output width

    def pad_to(a, shape):
        return jnp.zeros(shape, a.dtype).at[: a.shape[0], : a.shape[1]].set(a)

    w1t = pad_to(w1.T, (pad_in, H))    # rows >= obs_dim are 0
    w2t = pad_to(w2.T, (pad_in, H))
    w3t = pad_to(w3.T, (pad_in, n3))   # lane-pads act_dim -> n3 with zeros
    w_all = jnp.concatenate([w1t, w2t, w3t], axis=1).astype(weight_dtype)

    b_all = jnp.zeros((1, 2 * H + n3), jnp.float32)
    b_all = b_all.at[0, 0:H].set(b1)
    b_all = b_all.at[0, H:2 * H].set(b2)
    b_all = b_all.at[0, 2 * H:2 * H + act_dim].set(b3)

    return {"w_all": w_all, "b_all": b_all,
            "obs_dim": obs_dim, "act_dim": act_dim, "k1": k1, "n3": n3}


def _pick_tb(B, obs_dim, out_lanes, out_bytes):
    """Batch tile: as large as the VMEM budget allows, >= 2 grid steps for v7x."""
    if B <= 256:
        # Acting-path batches: single tile. This path is launch + weight-DMA latency
        # bound; batching env steps per call is the only real lever here.
        return B
    # Per-row VMEM: double-buffered obs (f32) + double-buffered out + ~3 f32 intermediates.
    per_row = 2 * obs_dim * 4 + 2 * out_lanes * out_bytes + 3 * H * 4
    budget = 24 << 20                  # headroom under v7x's 32 MiB default scoped VMEM
    cap = max(256, (budget // per_row) // 8 * 8)
    tb = min(2048, cap)                # sweep 2048-4096 per generation if chasing the last %
    # Ensure >= 2 grid steps so the "parallel" batch axis uses both v7x TensorCores.
    return min(tb, _round_up(_cdiv(B, 2), 8))


def dqn_forward_padded(obs, prepped, out_dtype=jnp.float32):
    """Hot-path entry point. Returns the lane-dense (B, n3) Q slab.

    Lanes [0, act_dim) hold the Q-values; lanes >= act_dim are exactly 0.
    Use out_dtype=jnp.bfloat16 to halve output HBM traffic if downstream tolerates it.
    """
    B, obs_dim = obs.shape
    assert obs_dim == prepped["obs_dim"]
    w_all, b_all = prepped["w_all"], prepped["b_all"]
    pad_in, wcols = w_all.shape
    k1, n3 = prepped["k1"], prepped["n3"]

    out_bytes = jnp.dtype(out_dtype).itemsize
    TB = _pick_tb(B, obs_dim, n3, out_bytes)
    grid = (_cdiv(B, TB),)

    return pl.pallas_call(
        functools.partial(_dqn_mlp_kernel, k1=k1, n3=n3),
        out_shape=jax.ShapeDtypeStruct((B, n3), out_dtype),
        grid=grid,
        in_specs=[
            pl.BlockSpec((TB, obs_dim), lambda i: (i, 0)),     # batch-tiled obs
            pl.BlockSpec((pad_in, wcols), lambda i: (0, 0)),   # weights: VMEM-resident
            pl.BlockSpec((1, wcols), lambda i: (0, 0)),        # biases:  VMEM-resident
        ],
        out_specs=pl.BlockSpec((TB, n3), lambda i: (i, 0)),    # lane-dense output slab
        compiler_params=pltpu.CompilerParams(
            dimension_semantics=("parallel",)),
    )(obs, w_all, b_all)


def dqn_forward(obs, prepped, out_dtype=jnp.float32):
    """Module-compatible forward: obs (B, obs_dim) -> Q (B, act_dim).

    NOTE: the [:, :act_dim] slice is a separate XLA copy; perf-critical consumers
    should use `dqn_forward_padded` (and e.g. argmax over the first act_dim lanes)
    to avoid re-reading the output slab.
    """
    return dqn_forward_padded(obs, prepped, out_dtype)[:, :prepped["act_dim"]]


def init_params(key, obs_dim, act_dim):
    """Deterministic init mirroring nn.Linear default (uniform +/- 1/sqrt(fan_in))."""
    params = {}
    layer_shapes = [
        ("fc_1", obs_dim, H),
        ("fc_2", H, H),
        ("fc_3", H, act_dim),
    ]
    for name, fan_in, fan_out in layer_shapes:
        key, kw, kb = jax.random.split(key, 3)
        bound = 1.0 / jnp.sqrt(jnp.float32(fan_in))
        params[f"{name}.weight"] = jax.random.uniform(
            kw, (fan_out, fan_in), jnp.float32, -bound, bound)
        params[f"{name}.bias"] = jax.random.uniform(
            kb, (fan_out,), jnp.float32, -bound, bound)
    return params


def _reference(obs, params):
    h1 = jnp.maximum(obs @ params["fc_1.weight"].T + params["fc_1.bias"], 0.0)
    h2 = jnp.maximum(h1 @ params["fc_2.weight"].T + params["fc_2.bias"], 0.0)
    return h2 @ params["fc_3.weight"].T + params["fc_3.bias"]


if __name__ == "__main__":
    obs_dim, act_dim = 32, 8
    key = jax.random.PRNGKey(0)
    key, kobs, kbig = jax.random.split(key, 3)

    params = init_params(key, obs_dim, act_dim)
    prepped_bf16 = prepare_params(params)                             # fast default
    prepped_f32 = prepare_params(params, weight_dtype=jnp.float32)    # tighter numerics

    q_ref = _reference

    # 1) Small acting-style batch: single tile, grid=(1,). Module-compatible output.
    obs_small = jax.random.normal(kobs, (8, obs_dim), jnp.float32)
    q_small = jax.block_until_ready(dqn_forward(obs_small, prepped_bf16))
    assert q_small.shape == (8, act_dim)
    err = float(jnp.max(jnp.abs(q_small - q_ref(obs_small, params))))
    assert jnp.allclose(q_small, q_ref(obs_small, params), atol=5e-2, rtol=5e-2), err

    # 2) Training-style batch: grid of 2 tiles (both v7x TensorCores get work).
    obs_big = jax.random.normal(kbig, (384, obs_dim), jnp.float32)
    q_big = jax.block_until_ready(dqn_forward(obs_big, prepped_bf16))
    assert q_big.shape == (384, act_dim)
    err = float(jnp.max(jnp.abs(q_big - q_ref(obs_big, params))))
    assert jnp.allclose(q_big, q_ref(obs_big, params), atol=5e-2, rtol=5e-2), err

    # 3) f32-weight variant (for TD-loss consumers).
    q_f32 = jax.block_until_ready(dqn_forward(obs_big, prepped_f32))
    err = float(jnp.max(jnp.abs(q_f32 - q_ref(obs_big, params))))
    assert jnp.allclose(q_f32, q_ref(obs_big, params), atol=5e-2, rtol=5e-2), err

    # 4) Hot-path padded slab with bf16 writeback (halves output HBM traffic).
    q_pad = jax.block_until_ready(
        dqn_forward_padded(obs_big, prepped_bf16, out_dtype=jnp.bfloat16))
    assert q_pad.shape == (384, 128) and q_pad.dtype == jnp.bfloat16
    assert jnp.allclose(q_pad[:, :act_dim].astype(jnp.float32), q_big,
                        atol=5e-2, rtol=5e-2)
    # Padded lanes are exactly zero (zero W3/b3 padding).
    assert float(jnp.max(jnp.abs(q_pad[:, act_dim:].astype(jnp.float32)))) == 0.0

    print("KERNEL_OK")
</pallas_src>

<mosaic_0001>
module attributes {stable_mosaic.version = 11 : i64} {
  func.func @_dqn_mlp_kernel(%arg0: i32, %arg1: memref<8x32xf32, #tpu.memory_space<vmem>>, %arg2: memref<128x384xbf16, #tpu.memory_space<vmem>>, %arg3: memref<1x384xf32, #tpu.memory_space<vmem>>, %arg4: memref<8x128xf32, #tpu.memory_space<vmem>>) attributes {dimension_semantics = [#tpu.dimension_semantics<parallel>], iteration_bounds = array<i64: 1>, scalar_prefetch = 0 : i64, scratch_operands = 0 : i64, tpu.core_type = #tpu.core_type<tc>, window_params = [{transform_indices = @transform_0, window_bounds = array<i64: 8, 32>}, {pipeline_mode = #tpu.pipeline_mode<synchronous>, transform_indices = @transform_1, window_bounds = array<i64: 128, 384>}, {pipeline_mode = #tpu.pipeline_mode<synchronous>, transform_indices = @transform_2, window_bounds = array<i64: 1, 384>}, {transform_indices = @transform_3, window_bounds = array<i64: 8, 128>}]} {
    %c0 = arith.constant 0 : index
    %c0_0 = arith.constant 0 : index
    %0 = vector.load %arg1[%c0, %c0_0] : memref<8x32xf32, #tpu.memory_space<vmem>>, vector<8x32xf32>
    %1 = arith.truncf %0 : vector<8x32xf32> to vector<8x32xbf16>
    %c0_1 = arith.constant 0 : index
    %c0_2 = arith.constant 0 : index
    %2 = vector.load %arg2[%c0_1, %c0_2] : memref<128x384xbf16, #tpu.memory_space<vmem>>, vector<32x128xbf16>
    %c0_3 = arith.constant 0 : index
    %c128 = arith.constant 128 : index
    %3 = vector.load %arg2[%c0_3, %c128] : memref<128x384xbf16, #tpu.memory_space<vmem>>, vector<128x128xbf16>
    %c0_4 = arith.constant 0 : index
    %c256 = arith.constant 256 : index
    %4 = vector.load %arg2[%c0_4, %c256] : memref<128x384xbf16, #tpu.memory_space<vmem>>, vector<128x128xbf16>
    %c0_5 = arith.constant 0 : index
    %c0_6 = arith.constant 0 : index
    %5 = vector.load %arg3[%c0_5, %c0_6] : memref<1x384xf32, #tpu.memory_space<vmem>>, vector<1x128xf32>
    %c0_7 = arith.constant 0 : index
    %c128_8 = arith.constant 128 : index
    %6 = vector.load %arg3[%c0_7, %c128_8] : memref<1x384xf32, #tpu.memory_space<vmem>>, vector<1x128xf32>
    %c0_9 = arith.constant 0 : index
    %c256_10 = arith.constant 256 : index
    %7 = vector.load %arg3[%c0_9, %c256_10] : memref<1x384xf32, #tpu.memory_space<vmem>>, vector<1x128xf32>
    %cst = arith.constant dense<0.000000e+00> : vector<8x128xf32>
    %8 = tpu.matmul %1, %2, %cst {dimension_numbers = #tpu.dot_dimension_numbers<[1], [0], [0], [1], [0, 0, 1, 1], [], []>} : vector<8x32xbf16>, vector<32x128xbf16>, vector<8x128xf32> -> vector<8x128xf32>
    %9 = vector.broadcast %5 : vector<1x128xf32> to vector<8x128xf32>
    %10 = arith.addf %8, %9 : vector<8x128xf32>
    %cst_11 = arith.constant 0.000000e+00 : f32
    %11 = vector.broadcast %cst_11 : f32 to vector<8x128xf32>
    %12 = arith.maximumf %10, %11 : vector<8x128xf32>
    %13 = arith.truncf %12 : vector<8x128xf32> to vector<8x128xbf16>
    %cst_12 = arith.constant dense<0.000000e+00> : vector<8x128xf32>
    %14 = tpu.matmul %13, %3, %cst_12 {dimension_numbers = #tpu.dot_dimension_numbers<[1], [0], [0], [1], [0, 0, 1, 1], [], []>} : vector<8x128xbf16>, vector<128x128xbf16>, vector<8x128xf32> -> vector<8x128xf32>
    %15 = vector.broadcast %6 : vector<1x128xf32> to vector<8x128xf32>
    %16 = arith.addf %14, %15 : vector<8x128xf32>
    %cst_13 = arith.constant 0.000000e+00 : f32
    %17 = vector.broadcast %cst_13 : f32 to vector<8x128xf32>
    %18 = arith.maximumf %16, %17 : vector<8x128xf32>
    %19 = arith.truncf %18 : vector<8x128xf32> to vector<8x128xbf16>
    %cst_14 = arith.constant dense<0.000000e+00> : vector<8x128xf32>
    %20 = tpu.matmul %19, %4, %cst_14 {dimension_numbers = #tpu.dot_dimension_numbers<[1], [0], [0], [1], [0, 0, 1, 1], [], []>} : vector<8x128xbf16>, vector<128x128xbf16>, vector<8x128xf32> -> vector<8x128xf32>
    %21 = vector.broadcast %7 : vector<1x128xf32> to vector<8x128xf32>
    %22 = arith.addf %20, %21 : vector<8x128xf32>
    %c0_15 = arith.constant 0 : index
    %c0_16 = arith.constant 0 : index
    %23 = vector.load %arg4[%c0_15, %c0_16] : memref<8x128xf32, #tpu.memory_space<vmem>>, vector<8x128xf32>
    tpu.vector_store %arg4[%c0_15, %c0_16], %22 {strides = array<i32>} : memref<8x128xf32, #tpu.memory_space<vmem>>, vector<8x128xf32>,
    return
  }
  func.func @transform_0(%arg0: i32) -> (i32, i32) {
    %c0_i32 = arith.constant 0 : i32
    %c0_i32_0 = arith.constant 0 : i32
    return %arg0, %c0_i32 : i32, i32
  }
  func.func @transform_1(%arg0: i32) -> (i32, i32) {
    %c0_i32 = arith.constant 0 : i32
    %c0_i32_0 = arith.constant 0 : i32
    %c0_i32_1 = arith.constant 0 : i32
    return %c0_i32, %c0_i32_0 : i32, i32
  }
  func.func @transform_2(%arg0: i32) -> (i32, i32) {
    %c0_i32 = arith.constant 0 : i32
    %c0_i32_0 = arith.constant 0 : i32
    %c0_i32_1 = arith.constant 0 : i32
    return %c0_i32, %c0_i32_0 : i32, i32
  }
  func.func @transform_3(%arg0: i32) -> (i32, i32) {
    %c0_i32 = arith.constant 0 : i32
    %c0_i32_0 = arith.constant 0 : i32
    return %arg0, %c0_i32 : i32, i32
  }
}

</mosaic_0001>

<bundles_post_ra>
// kernel: tpu_custom_call.1
= control target key start
LH: loop header
LB: loop body
LE: loop exit
PB: predicated region body
PF: predicated region fallthrough
CT: control target
= control target key end

     0   :  { %8 = vsyncpa [#allocation3], 0  ;;  %s605_s0 = inlined_call_operand.hbm [shape: f32[8,32], index: 0, kind: input, shape index: {}]   ;;  %s606_s1 = inlined_call_operand.hbm [shape: bf16[128,384], index: 1, kind: input, shape index: {}]   ;;  %s607_s2 = inlined_call_operand.vmem [shape: f32[1,384], index: 2, kind: input, shape index: {}]   ;;  %s608_s3 = inlined_call_operand.hbm [shape: f32[8,128], index: 3, kind: output, shape index: {}]  }
   0x1   :  { %9 = vsyncpa [#allocation6], 0 }
   0x2   :  { %10 = vsyncpa [#allocation4], 0  ;;  %s536_s12 = smov [#allocation2]   ;;  %s537_s14 = smov [#allocation5]  }
   0x3   :  { %s17_s13 = sshll.u32 %s536_s12, 4  ;;  %s26_s15 = sshll.u32 %s537_s14, 4  ;;  %s18_s13 = int_to_ptr.vmem [resolvable:$true] %s17_s13  ;;  %s27_s15 = int_to_ptr.vmem [resolvable:$true] %s26_s15 }
   0x4   :  { %s478_s16 = scalar_lea.vmem %s18_s13, 128  ;;  %p483_p1 = scmp.lt.s32.totalorder %s18_s13, %s18_s13 }
   0x5   :  { %p479_p0 = scmp.ne.s32.totalorder %s18_s13, %s478_s16  ;;  %p484_p2 = scmp.lt.s32.totalorder %s478_s16, %s478_s16 }
   0x7   :  { %p485_p3 = por %p484_p2, %p483_p1 }
   0x9   :  { %p486_p4 = pnand %p485_p3, %p479_p0 }
   0xb   :  { %489 = shalt.err (!%p486_p4)
}
   0xc   :  { %20 = dma.hbm_to_vmem [thread:$0]  %s605_s0, 128, %s18_s13, [#allocation3]  }
   0xd   :  { %s498_s19 = scalar_lea.vmem %s27_s15, 3072  ;;  %p503_p6 = scmp.lt.s32.totalorder %s27_s15, %s27_s15 }
   0xe   :  { %p499_p5 = scmp.ne.s32.totalorder %s27_s15, %s498_s19  ;;  %p504_p7 = scmp.lt.s32.totalorder %s498_s19, %s498_s19 }
  0x10   :  { %p505_p8 = por %p504_p7, %p503_p6 }
  0x12   :  { %p506_p9 = pnand %p505_p8, %p499_p5 }
  0x14   :  { %509 = shalt.err (!%p506_p9)
}
  0x15   :  { %s538_s20 = smov 192   ;;  %s539_s21 = smov 12  }
  0x16   :  { %32 = dma.hbm_to_vmem [thread:$0]  %s606_s1, 3072, %s27_s15, [#allocation6], %s538_s20, %s538_s20, %s539_s21  }
  0x17   :  { %530 = dma.done.wait [#allocation3], 128  }
  0x18   :  { %531 = vsyncadd [#allocation3], 4294967168 }
  0x19   :  { %532 = dma.done.wait [#allocation6], 3072  }
  0x1a   :  { %533 = vsyncadd [#allocation6], 4294964224  ;;  %v540_v0 = vmov 0.0   ;;  %vm541_vm0 = vmmov 0   ;;  %v452_v1 = vld [vmem:[#allocation5 + $0x18] ss:$12 sps:$4 sm:$0xff]  }
  0x1b   :  { %397 = vmatprep.subr.bf16.mxu0 %v540_v0  ;;  %401 = vmatprep.mubr.msk.bf16.mxu0 %vm541_vm0, %v540_v0  ;;  %v453_v2 = vld [vmem:[#allocation5] ss:$12 sps:$4 sm:$0xff]   ;;  %v42_v3 = vld [vmem:[#allocation2] sm:$0xff]  ;;  %vm101_vm1 = vcmask 261120   ;;  %v457_v8 = vld [vmem:[#allocation5 + $0x64] ss:$12 sps:$4 sm:$0xff]  }
  0x1c   :  { %405 = vmatprep.subr.bf16.mxu1 %v540_v0  ;;  %421 = vmatprep.mubr.msk.bf16.mxu1 %vm541_vm0, %v540_v0  ;;  %v454_v4 = vld [vmem:[#allocation5 + $0xac] ss:$12 sps:$4 sm:$0xff]   ;;  %v43_v5 = vpack.c.bf16 %v42_v3, %v42_v3  ;;  %v455_v6 = vld [vmem:[#allocation5 + $0x94] ss:$12 sps:$4 sm:$0xff]   ;;  %v456_v7 = vld [vmem:[#allocation5 + $0x7c] ss:$12 sps:$4 sm:$0xff]  }
  0x1d   :  { %398 = vmatpush3.bf16.msra.mxu0 %v452_v1  ;;  %406 = vmatpush3.bf16.msra.mxu1 %v454_v4  ;;  %v458_v9 = vld [vmem:[#allocation5 + $0x4c] ss:$12 sps:$4 sm:$0xff]   ;;  %v459_v10 = vld [vmem:[#allocation5 + $0x34] ss:$12 sps:$4 sm:$0xff]   ;;  %v460_v11 = vld [vmem:[#allocation5 + $0x1c] ss:$12 sps:$4 sm:$0xff]  }
  0x1e   :  { %399 = vmatprep.subr.bf16.mxu0 %v540_v0  ;;  %407 = vmatprep.subr.bf16.mxu1 %v540_v0  ;;  %v461_v12 = vld [vmem:[#allocation5 + $0x4] ss:$12 sps:$4 sm:$0xff]   ;;  %v464_v15 = vld [vmem:[#allocation5 + $0x80] ss:$12 sps:$4 sm:$0xff]   ;;  %v465_v16 = vld [vmem:[#allocation5 + $0x68] ss:$12 sps:$4 sm:$0xff]  }
  0x1f   :  { %v462_v13 = vld [vmem:[#allocation5 + $0xb0] ss:$12 sps:$4 sm:$0xff]   ;;  %v463_v14 = vld [vmem:[#allocation5 + $0x98] ss:$12 sps:$4 sm:$0xff]   ;;  %v468_v27 = vld [vmem:[#allocation5 + $0x20] ss:$12 sps:$4 sm:$0xff]  }
  0x20   :  { %v466_v17 = vld [vmem:[#allocation5 + $0x50] ss:$12 sps:$4 sm:$0xff]   ;;  %v467_v18 = vld [vmem:[#allocation5 + $0x38] ss:$12 sps:$4 sm:$0xff]   ;;  %v469_v28 = vld [vmem:[#allocation5 + $0x8] ss:$12 sps:$4 sm:$0xff]  }
  0x21   :  { %400 = vmatpush3.bf16.msra.mxu0 %v453_v2  ;;  %408 = vmatpush3.bf16.msra.mxu1 %v455_v6  ;;  %v354_v19 = vld [vmem:[%s607_s2] ss:$0 sm:$0xff]  ;;  %v358_v29 = vld [vmem:[%s607_s2 + $0x1] ss:$0 sm:$0xff]  ;;  %v367_v37 = vld [vmem:[%s607_s2 + $0x2] ss:$0 sm:$0xff] }
  0x22   :  { %425 = vmatprep.subr.bf16.mxu0 %v540_v0  ;;  %409 = vmatprep.subr.bf16.mxu1 %v540_v0  ;;  %s542_s28 = smov [#allocation7]  }
  0x23   :  { %s344_s29 = sshll.u32 %s542_s28, 4  ;;  %s345_s29 = int_to_ptr.vmem [resolvable:$true] %s344_s29 }
  0x24   :  { %402 = vmatmul.mubr.msk.bf16.vlgmr.msra.gmra.mxu0 %vm101_vm1, %v43_v5  ;;  %s510_s30 = scalar_lea.vmem %s345_s29, 128  ;;  %p515_p11 = scmp.lt.s32.totalorder %s345_s29, %s345_s29 }
  0x25   :  { %441 = vmatprep.mubr.msk.bf16.mxu0 %vm541_vm0, %v540_v0  ;;  %410 = vmatpush3.bf16.msra.mxu1 %v456_v7  ;;  %p511_p10 = scmp.ne.s32.totalorder %s345_s29, %s510_s30  ;;  %p516_p12 = scmp.lt.s32.totalorder %s510_s30, %s510_s30 }
  0x26   :  { %411 = vmatprep.subr.bf16.mxu1 %v540_v0  ;;  %426 = vmatpush3.bf16.msra.mxu0 %v462_v13 }
  0x27   :  { %427 = vmatprep.subr.bf16.mxu0 %v540_v0  ;;  %p517_p13 = por %p516_p12, %p515_p11 }
  0x29   :  { %412 = vmatpush3.bf16.msra.mxu1 %v457_v8  ;;  %p518_p0 = pnand %p517_p13, %p511_p10 }
  0x2a   :  { %413 = vmatprep.subr.bf16.mxu1 %v540_v0  ;;  %428 = vmatpush3.bf16.msra.mxu0 %v463_v14 }
  0x2b   :  { %429 = vmatprep.subr.bf16.mxu0 %v540_v0 }
  0x2d   :  { %414 = vmatpush3.bf16.msra.mxu1 %v458_v9 }
  0x2e   :  { %415 = vmatprep.subr.bf16.mxu1 %v540_v0  ;;  %430 = vmatpush3.bf16.msra.mxu0 %v464_v15 }
  0x2f   :  { %431 = vmatprep.subr.bf16.mxu0 %v540_v0 }
  0x31   :  { %416 = vmatpush3.bf16.msra.mxu1 %v459_v10 }
  0x32   :  { %417 = vmatprep.subr.bf16.mxu1 %v540_v0  ;;  %432 = vmatpush3.bf16.msra.mxu0 %v465_v16 }
  0x33   :  { %433 = vmatprep.subr.bf16.mxu0 %v540_v0 }
  0x35   :  { %418 = vmatpush3.bf16.msra.mxu1 %v460_v11 }
  0x36   :  { %419 = vmatprep.subr.bf16.mxu1 %v540_v0  ;;  %434 = vmatpush3.bf16.msra.mxu0 %v466_v17 }
  0x37   :  { %435 = vmatprep.subr.bf16.mxu0 %v540_v0 }
  0x39   :  { %420 = vmatpush3.bf16.msra.mxu1 %v461_v12 }
  0x3a   :  { %436 = vmatpush3.bf16.msra.mxu0 %v467_v18 }
  0x3b   :  { %437 = vmatprep.subr.bf16.mxu0 %v540_v0 }
  0x3e   :  { %438 = vmatpush3.bf16.msra.mxu0 %v468_v27 }
  0x3f   :  { %439 = vmatprep.subr.bf16.mxu0 %v540_v0 }
  0x42   :  { %440 = vmatpush3.bf16.msra.mxu0 %v469_v28 }
  0xe4   :  { %v139_v20 = vpop.f32.mrf.mxu0 }
  0xe5   :  { %v140_v21 = vadd.f32 %v354_v19, %v139_v20 }
  0xe6   :  { %v403_v22 = vpop.f32.mrf.mxu0 }
  0xe7   :  { %v145_v23 = vmax.f32 %v140_v21, 0.0 }
  0xe8   :  { %v142_v24 = vpop.f32.mrf.mxu0 }
  0xe9   :  { %v146_v25 = vpack.c.bf16 %v145_v23, %v145_v23 }
  0xea   :  { %v404_v26 = vpop.f32.mrf.mxu0 }
  0xeb   :  { %422 = vmatmul.mubr.bf16.vlgmr.msra.gmra.mxu1 %v146_v25 }
 0x1ab   :  { %v235_v30 = vpop.f32.mrf.mxu1 }
 0x1ac   :  { %v236_v31 = vadd.f32 %v358_v29, %v235_v30 }
 0x1ad   :  { %v423_v32 = vpop.f32.mrf.mxu1 }
 0x1ae   :  { %v241_v33 = vmax.f32 %v236_v31, 0.0 }
 0x1af   :  { %v238_v34 = vpop.f32.mrf.mxu1 }
 0x1b0   :  { %v242_v35 = vpack.c.bf16 %v241_v33, %v241_v33 }
 0x1b1   :  { %v424_v36 = vpop.f32.mrf.mxu1 }
 0x1b2   :  { %442 = vmatmul.mubr.bf16.vlgmr.msra.gmra.mxu0 %v242_v35 }
 0x272   :  { %v331_v38 = vpop.f32.mrf.mxu0 }
 0x273   :  { %v332_v39 = vadd.f32 %v367_v37, %v331_v38 }
 0x274   :  { %v443_v40 = vpop.f32.mrf.mxu0 }
 0x275   :  { %337 = vst [vmem:[#allocation7] sm:$0xff] %v332_v39 }
 0x276   :  { %v334_v41 = vpop.f32.mrf.mxu0 }
 0x277   :  { %521 = shalt.err (!%p518_p0)
}
 0x278   :  { %347 = dma.vmem_to_hbm [thread:$0]  %s345_s29, 128, %s608_s3, [#allocation4]   ;;  %v444_v42 = vpop.f32.mrf.mxu0 }
 0x279   :  { %534 = dma.done.wait [#allocation4], 128  }
 0x27a   :  { %535 = vsyncadd [#allocation4], 4294967168 }
 0x27b   :  { %351 = vsyncpa [#allocation3], 1 }
 0x27c   :  { %352 = vsyncpa [#allocation6], 1 }
 0x27d   :  { %353 = vsyncpa [#allocation4], 1 }

</bundles_post_ra>
